<compile_context>
chip_gen: v7x
topology: tpu7x:2x2x1
jax: 0.10.0
libtpu: 0.0.40
codegen_flags: <defaults>
</compile_context>

<pallas_src>
import jax
import jax.numpy as jnp
from jax.experimental import pallas as pl
from jax.experimental.pallas import tpu as pltpu

THRESHOLD = 0.5          # ImageProcessor.binarize_array threshold
_LANE = 128
_SUBLANE = 8
# 256K f32 elements = 1 MiB per input per block (sublane-padded footprint).
_MAX_BLOCK_ELEMS = 256 * 1024


def _round_up(x, m):
    return ((x + m - 1) // m) * m


def _choose_fold(batch, pixels):
    """Fold factor F: view [B, P] as [B*F, P/F] (a free, contiguous reshape) so the
    row count fills all 8 sublanes.  Prefer the smallest F with (B*F) % 8 == 0."""
    for f in (1, 2, 4, 8):
        if pixels % f == 0 and (batch * f) % _SUBLANE == 0:
            return f
    for f in (8, 4, 2):          # best-effort sublane fill (e.g. odd pixel counts)
        if pixels % f == 0:
            return f
    return 1


def _make_kernel(row_len, tile_l, num_k, needs_mask):
    def kernel(x_ref, t_ref, m_ref, out_ref, acc_ref):
        # x/t/m blocks: (TB, TILE_L); out block: (1, TB, 1); acc: (TB, TILE_L) f32
        k = pl.program_id(2)

        @pl.when(k == 0)
        def _():
            acc_ref[...] = jnp.zeros_like(acc_ref)

        x = x_ref[...].astype(jnp.float32)
        t = t_ref[...].astype(jnp.float32)
        m = m_ref[...].astype(jnp.float32)

        # sigmoid(x) == 0.5*(tanh(x/2)+1): a single EUP op instead of exp+reciprocal.
        s = 0.5 * (jnp.tanh(0.5 * x) + 1.0)
        pred_pos = (x > 0.0).astype(jnp.float32)     # == sigmoid(x) > 0.5, exactly
        gt_pos = (t > 0.0).astype(jnp.float32)
        res = pred_pos - gt_pos                      # {+1, -1, 0}
        contrib = res * m * s

        if needs_mask:                               # static: traced only when needed
            l_tile = pl.program_id(1) * num_k + k    # un-clamped lane-tile index
            pix = l_tile * tile_l + jax.lax.broadcasted_iota(
                jnp.int32, contrib.shape, 1)
            contrib = jnp.where(pix < row_len, contrib, 0.0)

        acc_ref[...] += contrib                      # element-wise only (VPU)

        @pl.when(k == pl.num_programs(2) - 1)
        def _():
            # Single cross-lane (XLU) reduce per (row-tile, chunk) block.
            row_sum = jnp.sum(acc_ref[...], axis=1, keepdims=True)   # (TB, 1)
            out_ref[...] = row_sum[None, :, :]

    return kernel


def boundary_loss(outputs, targets, masks, *, max_block_elems=_MAX_BLOCK_ELEMS):
    """outputs: [B,1,H,W] logits; targets: [B,H,W]; masks: [B,H,W] -> loss: [B]."""
    B, C, H, W = outputs.shape
    assert C == 1, "reference module uses single-channel logits"
    P = H * W

    # Free contiguous reshapes (no HBM copies, no padding).
    F = _choose_fold(B, P)
    rows, L = B * F, P // F
    x2 = outputs.reshape(rows, L)
    t2 = targets.reshape(rows, L)
    m2 = masks.reshape(rows, L)

    # Row (sublane) tiling.
    TB = min(rows, _SUBLANE)
    grid_b = pl.cdiv(rows, TB)

    # Lane tiling: cap the sublane-padded block footprint at max_block_elems f32 words.
    sub_pad = _round_up(TB, _SUBLANE)
    max_tile_l = max(_LANE, (max_block_elems // sub_pad) // _LANE * _LANE)
    TILE_L = min(_round_up(L, _LANE), max_tile_l)
    num_l = pl.cdiv(L, TILE_L)

    # Split the reduction into 2 parallel chunks when the row axis alone cannot feed
    # both v7x TensorCores (no effect on single-TC v5e/v6e).
    num_c = 2 if (grid_b == 1 and num_l >= 2) else 1
    num_k = pl.cdiv(num_l, num_c)
    needs_mask = (num_c * num_k * TILE_L) != L

    def in_map(b, c, k):
        l = c * num_k + k
        if num_c * num_k != num_l:            # static: clamp the duplicate tail tile
            l = jnp.minimum(l, num_l - 1)     # (its contribution is masked to zero)
        return (b, l)

    kernel = _make_kernel(row_len=L, tile_l=TILE_L, num_k=num_k, needs_mask=needs_mask)

    out = pl.pallas_call(
        kernel,
        out_shape=jax.ShapeDtypeStruct((num_c, rows, 1), jnp.float32),
        grid_spec=pltpu.PrefetchScalarGridSpec(
            num_scalar_prefetch=0,
            grid=(grid_b, num_c, num_k),      # reduction (lane-tile) axis last
            in_specs=[
                pl.BlockSpec((TB, TILE_L), in_map),   # logits
                pl.BlockSpec((TB, TILE_L), in_map),   # targets
                pl.BlockSpec((TB, TILE_L), in_map),   # masks
            ],
            out_specs=pl.BlockSpec((1, TB, 1), lambda b, c, k: (c, b, 0)),
            scratch_shapes=[pltpu.VMEM((TB, TILE_L), jnp.float32)],
        ),
        compiler_params=pltpu.CompilerParams(
            dimension_semantics=("parallel", "parallel", "arbitrary"),
        ),
    )(x2, t2, m2)

    per_row = jnp.sum(out[:, :, 0], axis=0)   # sum the (tiny) per-chunk partials
    return per_row.reshape(B, F).sum(axis=1)  # regroup folded rows per image -> [B]


def _reference_loss(outputs, targets, masks):
    """Plain-JAX reference for correctness checking."""
    s = jax.nn.sigmoid(outputs.astype(jnp.float32))[:, 0]      # [B,H,W]
    binary = s > THRESHOLD
    t = targets.astype(jnp.float32)
    res = jnp.where(binary & (t <= 0.0), 1.0, 0.0)
    res = jnp.where((t > 0.0) & (~binary), -1.0, res)
    weight = res * masks.astype(jnp.float32)
    return jnp.sum(weight * s, axis=(1, 2))


def _run_case(key, B, H, W, **kw):
    k1, k2, k3 = jax.random.split(key, 3)
    outputs = jax.random.normal(k1, (B, 1, H, W), dtype=jnp.float32)          # logits
    targets = (jax.random.normal(k2, (B, H, W)) > 0.0).astype(jnp.float32)    # binary GT
    masks = jax.random.uniform(k3, (B, H, W), dtype=jnp.float32)              # weights

    loss = jax.block_until_ready(boundary_loss(outputs, targets, masks, **kw))
    ref = jax.block_until_ready(_reference_loss(outputs, targets, masks))
    assert loss.shape == (B,)
    assert jnp.allclose(loss, ref, atol=1e-3, rtol=1e-5), (loss, ref)


if __name__ == "__main__":
    key = jax.random.PRNGKey(0)
    ka, kb, kc = jax.random.split(key, 3)

    # Typical small case: B=2 folds to 8 full-sublane rows; single lane tile + mask.
    _run_case(ka, B=2, H=16, W=16)

    # Non-multiple-of-8 batch (no padding copy) + multi-step lane reduction
    # (accumulator path); the tiny block budget is test-only to force num_k > 1.
    _run_case(kb, B=10, H=24, W=40, max_block_elems=1024)

    # Single image: chunked ("parallel") pixel axis (v7x megacore path), odd tile
    # count exercises the clamped duplicate-tile path + remainder masking.
    _run_case(kc, B=1, H=48, W=64, max_block_elems=1024)

    print("KERNEL_OK")
</pallas_src>

<mosaic_0001>
module attributes {stable_mosaic.version = 11 : i64} {
  func.func @kernel(%arg0: i32, %arg1: i32, %arg2: i32, %arg3: memref<8x128xf32, #tpu.memory_space<vmem>>, %arg4: memref<8x128xf32, #tpu.memory_space<vmem>>, %arg5: memref<8x128xf32, #tpu.memory_space<vmem>>, %arg6: memref<1x8x1xf32, #tpu.memory_space<vmem>>, %arg7: memref<8x128xf32, #tpu.memory_space<vmem>>) attributes {dimension_semantics = [#tpu.dimension_semantics<parallel>, #tpu.dimension_semantics<parallel>, #tpu.dimension_semantics<arbitrary>], iteration_bounds = array<i64: 1, 1, 1>, scalar_prefetch = 0 : i64, scratch_operands = 1 : i64, tpu.core_type = #tpu.core_type<tc>, window_params = [{transform_indices = @transform_0, window_bounds = array<i64: 8, 128>}, {transform_indices = @transform_1, window_bounds = array<i64: 8, 128>}, {transform_indices = @transform_2, window_bounds = array<i64: 8, 128>}, {transform_indices = @transform_3, window_bounds = array<i64: 1, 8, 1>}]} {
    %c0_i32 = arith.constant 0 : i32
    %0 = arith.cmpi eq, %arg2, %c0_i32 : i32
    %1 = arith.extui %0 : i1 to i32
    %c0_i32_0 = arith.constant 0 : i32
    %2 = arith.cmpi ne, %1, %c0_i32_0 : i32
    scf.if %2 {
      %cst_17 = arith.constant 0.000000e+00 : f32
      %40 = vector.broadcast %cst_17 : f32 to vector<8x128xf32>
      %c0_18 = arith.constant 0 : index
      %c0_19 = arith.constant 0 : index
      %41 = vector.load %arg7[%c0_18, %c0_19] : memref<8x128xf32, #tpu.memory_space<vmem>>, vector<8x128xf32>
      tpu.vector_store %arg7[%c0_18, %c0_19], %40 {strides = array<i32>} : memref<8x128xf32, #tpu.memory_space<vmem>>, vector<8x128xf32>,
    } else {
    }
    %c0 = arith.constant 0 : index
    %c0_1 = arith.constant 0 : index
    %3 = vector.load %arg3[%c0, %c0_1] : memref<8x128xf32, #tpu.memory_space<vmem>>, vector<8x128xf32>
    %c0_2 = arith.constant 0 : index
    %c0_3 = arith.constant 0 : index
    %4 = vector.load %arg4[%c0_2, %c0_3] : memref<8x128xf32, #tpu.memory_space<vmem>>, vector<8x128xf32>
    %c0_4 = arith.constant 0 : index
    %c0_5 = arith.constant 0 : index
    %5 = vector.load %arg5[%c0_4, %c0_5] : memref<8x128xf32, #tpu.memory_space<vmem>>, vector<8x128xf32>
    %cst = arith.constant 5.000000e-01 : f32
    %6 = vector.broadcast %cst : f32 to vector<8x128xf32>
    %7 = arith.mulf %6, %3 : vector<8x128xf32>
    %8 = math.tanh %7 : vector<8x128xf32>
    %cst_6 = arith.constant 1.000000e+00 : f32
    %9 = vector.broadcast %cst_6 : f32 to vector<8x128xf32>
    %10 = arith.addf %8, %9 : vector<8x128xf32>
    %cst_7 = arith.constant 5.000000e-01 : f32
    %11 = vector.broadcast %cst_7 : f32 to vector<8x128xf32>
    %12 = arith.mulf %11, %10 : vector<8x128xf32>
    %cst_8 = arith.constant 0.000000e+00 : f32
    %13 = vector.broadcast %cst_8 : f32 to vector<8x128xf32>
    %14 = arith.cmpf ogt, %3, %13 : vector<8x128xf32>
    %15 = arith.extui %14 : vector<8x128xi1> to vector<8x128xi32>
    %16 = arith.sitofp %15 : vector<8x128xi32> to vector<8x128xf32>
    %cst_9 = arith.constant 0.000000e+00 : f32
    %17 = vector.broadcast %cst_9 : f32 to vector<8x128xf32>
    %18 = arith.cmpf ogt, %4, %17 : vector<8x128xf32>
    %19 = arith.extui %18 : vector<8x128xi1> to vector<8x128xi32>
    %20 = arith.sitofp %19 : vector<8x128xi32> to vector<8x128xf32>
    %21 = arith.subf %16, %20 : vector<8x128xf32>
    %22 = arith.mulf %21, %5 : vector<8x128xf32>
    %23 = arith.mulf %22, %12 : vector<8x128xf32>
    %c1_i32 = arith.constant 1 : i32
    %24 = arith.muli %arg1, %c1_i32 : i32
    %25 = arith.addi %24, %arg2 : i32
    %c128_i32 = arith.constant 128 : i32
    %26 = arith.muli %25, %c128_i32 : i32
    %27 = tpu.iota {dimensions = array<i32: 1>} : vector<8x128xi32>
    %28 = vector.broadcast %26 : i32 to vector<8x128xi32>
    %29 = arith.addi %28, %27 : vector<8x128xi32>
    %c64_i32 = arith.constant 64 : i32
    %30 = vector.broadcast %c64_i32 : i32 to vector<8x128xi32>
    %31 = arith.cmpi slt, %29, %30 : vector<8x128xi32>
    %cst_10 = arith.constant 0.000000e+00 : f32
    %32 = vector.broadcast %cst_10 : f32 to vector<8x128xf32>
    %33 = arith.select %31, %23, %32 : vector<8x128xi1>, vector<8x128xf32>
    %c0_11 = arith.constant 0 : index
    %c0_12 = arith.constant 0 : index
    %34 = vector.load %arg7[%c0_11, %c0_12] : memref<8x128xf32, #tpu.memory_space<vmem>>, vector<8x128xf32>
    %35 = arith.addf %34, %33 : vector<8x128xf32>
    %c0_13 = arith.constant 0 : index
    %c0_14 = arith.constant 0 : index
    %36 = vector.load %arg7[%c0_13, %c0_14] : memref<8x128xf32, #tpu.memory_space<vmem>>, vector<8x128xf32>
    tpu.vector_store %arg7[%c0_13, %c0_14], %35 {strides = array<i32>} : memref<8x128xf32, #tpu.memory_space<vmem>>, vector<8x128xf32>,
    %c0_i32_15 = arith.constant 0 : i32
    %37 = arith.cmpi eq, %arg2, %c0_i32_15 : i32
    %38 = arith.extui %37 : i1 to i32
    %c0_i32_16 = arith.constant 0 : i32
    %39 = arith.cmpi ne, %38, %c0_i32_16 : i32
    scf.if %39 {
      %c0_17 = arith.constant 0 : index
      %c0_18 = arith.constant 0 : index
      %40 = vector.load %arg7[%c0_17, %c0_18] : memref<8x128xf32, #tpu.memory_space<vmem>>, vector<8x128xf32>
      %cst_19 = arith.constant dense<0.000000e+00> : vector<8xf32>
      %41 = vector.multi_reduction <add>, %40, %cst_19 [1] : vector<8x128xf32> to vector<8xf32>
      %42 = vector.shape_cast %41 : vector<8xf32> to vector<8x1xf32>
      %43 = vector.shape_cast %42 : vector<8x1xf32> to vector<1x8x1xf32>
      %c0_20 = arith.constant 0 : index
      %c0_21 = arith.constant 0 : index
      %c0_22 = arith.constant 0 : index
      %44 = vector.load %arg6[%c0_20, %c0_21, %c0_22] : memref<1x8x1xf32, #tpu.memory_space<vmem>>, vector<1x8x1xf32>
      tpu.vector_store %arg6[%c0_20, %c0_21, %c0_22], %43 {strides = array<i32>} : memref<1x8x1xf32, #tpu.memory_space<vmem>>, vector<1x8x1xf32>,
    } else {
    }
    return
  }
  func.func @transform_0(%arg0: i32, %arg1: i32, %arg2: i32) -> (i32, i32) {
    %c1_i32 = arith.constant 1 : i32
    %0 = arith.muli %arg1, %c1_i32 : i32
    %1 = arith.addi %0, %arg2 : i32
    %c0_i32 = arith.constant 0 : i32
    return %arg0, %1 : i32, i32
  }
  func.func @transform_1(%arg0: i32, %arg1: i32, %arg2: i32) -> (i32, i32) {
    %c1_i32 = arith.constant 1 : i32
    %0 = arith.muli %arg1, %c1_i32 : i32
    %1 = arith.addi %0, %arg2 : i32
    %c0_i32 = arith.constant 0 : i32
    return %arg0, %1 : i32, i32
  }
  func.func @transform_2(%arg0: i32, %arg1: i32, %arg2: i32) -> (i32, i32) {
    %c1_i32 = arith.constant 1 : i32
    %0 = arith.muli %arg1, %c1_i32 : i32
    %1 = arith.addi %0, %arg2 : i32
    %c0_i32 = arith.constant 0 : i32
    return %arg0, %1 : i32, i32
  }
  func.func @transform_3(%arg0: i32, %arg1: i32, %arg2: i32) -> (i32, i32, i32) {
    %c0_i32 = arith.constant 0 : i32
    %c0_i32_0 = arith.constant 0 : i32
    return %arg1, %arg0, %c0_i32 : i32, i32, i32
  }
}

</mosaic_0001>

<bundles_post_ra>
// kernel: tpu_custom_call.1
= control target key start
LH: loop header
LB: loop body
LE: loop exit
PB: predicated region body
PF: predicated region fallthrough
CT: control target
= control target key end

     0   :  { %8 = vsyncpa [#allocation4], 0  ;;  %s248_s0 = inlined_call_operand.hbm [shape: f32[8,64], index: 0, kind: input, shape index: {}]   ;;  %s249_s1 = inlined_call_operand.hbm [shape: f32[8,64], index: 1, kind: input, shape index: {}]   ;;  %s250_s2 = inlined_call_operand.hbm [shape: f32[8,64], index: 2, kind: input, shape index: {}]   ;;  %s251_s3 = inlined_call_operand.vmem [shape: f32[1,8,1], index: 3, kind: output, shape index: {}]  }
   0x1   :  { %9 = vsyncpa [#allocation6], 0  ;;  %s185_s12 = smov [#allocation5]   ;;  %s186_s14 = smov [#allocation3]  }
   0x2   :  { %s32_s13 = sshll.u32 %s185_s12, 4  ;;  %s19_s15 = sshll.u32 %s186_s14, 4  ;;  %s33_s13 = int_to_ptr.vmem [resolvable:$true] %s32_s13  ;;  %s20_s15 = int_to_ptr.vmem [resolvable:$true] %s19_s15 }
   0x3   :  { %s115_s18 = scalar_lea.hbm %s249_s1, 128 }
   0x4   :  { %p116_p0 = scmp.ne.s32.totalorder %s249_s1, %s115_s18  ;;  %p119_p1 = scmp.lt.u32.totalorder %s115_s18, %s249_s1 }
   0x6   :  { %p121_p2 = pnand %p119_p1, %p116_p0 }
   0x8   :  { %124 = shalt.err (!%p121_p2)
}
   0x9   :  { %s125_s23 = scalar_lea.vmem %s33_s13, 128  ;;  %p130_p4 = scmp.lt.s32.totalorder %s33_s13, %s33_s13 }
   0xa   :  { %p126_p3 = scmp.ne.s32.totalorder %s33_s13, %s125_s23  ;;  %p131_p5 = scmp.lt.s32.totalorder %s125_s23, %s125_s23 }
   0xc   :  { %p132_p6 = por %p131_p5, %p130_p4 }
   0xe   :  { %p133_p7 = pnand %p132_p6, %p126_p3 }
  0x10   :  { %136 = shalt.err (!%p133_p7)
}
  0x11   :  { %35 = dma.hbm_to_vmem [thread:$0]  %s249_s1, 128, %s33_s13, [#allocation6]  }
  0x12   :  { %s137_s28 = scalar_lea.hbm %s248_s0, 128 }
  0x13   :  { %p138_p8 = scmp.ne.s32.totalorder %s248_s0, %s137_s28  ;;  %p141_p9 = scmp.lt.u32.totalorder %s137_s28, %s248_s0 }
  0x15   :  { %p143_p10 = pnand %p141_p9, %p138_p8 }
  0x17   :  { %146 = shalt.err (!%p143_p10)
}
  0x18   :  { %s147_s6 = scalar_lea.vmem %s20_s15, 128  ;;  %p152_p12 = scmp.lt.s32.totalorder %s20_s15, %s20_s15 }
  0x19   :  { %p148_p11 = scmp.ne.s32.totalorder %s20_s15, %s147_s6  ;;  %p153_p13 = scmp.lt.s32.totalorder %s147_s6, %s147_s6 }
  0x1b   :  { %p154_p0 = por %p153_p13, %p152_p12 }
  0x1d   :  { %p155_p1 = pnand %p154_p0, %p148_p11 }
  0x1f   :  { %158 = shalt.err (!%p155_p1)
}
  0x20   :  { %22 = dma.hbm_to_vmem [thread:$0]  %s248_s0, 128, %s20_s15, [#allocation4]  }
  0x21   :  { %s187_s8 = smov [#allocation7]   ;;  %s159_s12 = scalar_lea.hbm %s250_s2, 128 }
  0x22   :  { %s45_s9 = sshll.u32 %s187_s8, 4  ;;  %p160_p2 = scmp.ne.s32.totalorder %s250_s2, %s159_s12  ;;  %s46_s9 = int_to_ptr.vmem [resolvable:$true] %s45_s9 }
  0x23   :  { %p163_p3 = scmp.lt.u32.totalorder %s159_s12, %s250_s2 }
  0x25   :  { %p165_p4 = pnand %p163_p3, %p160_p2 }
  0x27   :  { %168 = shalt.err (!%p165_p4)
}
  0x28   :  { %s169_s18 = scalar_lea.vmem %s46_s9, 128  ;;  %p174_p6 = scmp.lt.s32.totalorder %s46_s9, %s46_s9 }
  0x29   :  { %p170_p5 = scmp.ne.s32.totalorder %s46_s9, %s169_s18  ;;  %p175_p7 = scmp.lt.s32.totalorder %s169_s18, %s169_s18 }
  0x2b   :  { %p176_p8 = por %p175_p7, %p174_p6 }
  0x2d   :  { %p177_p9 = pnand %p176_p8, %p170_p5 }
  0x2f   :  { %180 = shalt.err (!%p177_p9)
}
  0x30   :  { %48 = dma.hbm_to_vmem [thread:$0]  %s250_s2, 128, %s46_s9, [#allocation6]  }
  0x31   :  { %181 = dma.done.wait [#allocation4], 128  }
  0x32   :  { %182 = vsyncadd [#allocation4], 4294967168 }
  0x33   :  { %183 = dma.done.wait [#allocation6], 256  }
  0x34   :  { %184 = vsyncadd [#allocation6], 4294967040  ;;  %v66_v0 = vld [vmem:[#allocation3] sm:$0xff]  ;;  %v67_v1 = vld [vmem:[#allocation5] sm:$0xff]  ;;  %v188_v3 = vmov 0.0   ;;  %v84_v6 = vlaneseq  ;;  %vm99_vm3 = vcmask 7168  }
  0x35   :  { %v69_v2 = vmul.f32 0.5, %v66_v0  ;;  %vm73_vm0 = vcmp.gt.f32.partialorder %v66_v0, 0.0  ;;  %vm76_vm1 = vcmp.gt.f32.partialorder %v67_v1, 0.0  ;;  %v68_v8 = vld [vmem:[#allocation7] sm:$0xff] }
  0x36   :  { %v107_v4 = vsel %vm73_vm0, 1.0, %v188_v3  ;;  %v108_v5 = vsel %vm76_vm1, 1.0, %v188_v3  ;;  %v85_v10 = vand.u32 127, %v84_v6 }
  0x37   :  { %113 = vtanh.f32 %v69_v2  ;;  %v79_v7 = vsub.f32 %v107_v4, %v108_v5 }
  0x38   :  { %vm88_vm2 = vcmp.lt.s32.totalorder %v85_v10, 64 }
  0x39   :  { %v80_v12 = vmul.f32 %v79_v7, %v68_v8 }
  0x41   :  { %v114_v9 = vpop.eup %113 }
  0x42   :  { %v71_v11 = vadd.f32 1.0, %v114_v9 }
  0x44   :  { %v72_v13 = vmul.f32 0.5, %v71_v11 }
  0x46   :  { %v81_v14 = vmul.f32 %v80_v12, %v72_v13 }
  0x48   :  { %v89_v15 = vsel %vm88_vm2, %v81_v14, 0.0 }
  0x49   :  { %97 = vadd.xlane.f32.xlu0 %v89_v15 }
  0xd6   :  { %v98_v16 = vpop.xlane.xlu0 %97 }
  0xd7   :  { %100 = vst.msk [vmem:[%s251_s3] sm:$0xff] %vm99_vm3, %v98_v16 }
  0xd8   :  { %105 = vsyncpa [#allocation4], 1 }
  0xd9   :  { %106 = vsyncpa [#allocation6], 1 }

</bundles_post_ra>
